<compile_context>
chip_gen: v7x
topology: tpu7x:2x2x1
jax: 0.10.0
libtpu: 0.0.40
codegen_flags: <defaults>
</compile_context>

<pallas_src>
import functools

import jax
import jax.numpy as jnp
from jax.experimental import pallas as pl
from jax.experimental.pallas import tpu as pltpu

LANE = 128             # TPU lane width (used only for VMEM footprint estimate)
DEFAULT_TILE_B = 2048  # batch rows per grid step; fits v7x VMEM comfortably


def _round_up(n, m):
    return ((n + m - 1) // m) * m


def _choose_tile_b(batch, tile_b, *, min_steps=4, min_rows_per_step=128):
    """Pick a batch tile: multiple of 8 sublanes, and for replay-sized batches
    keep >= min_steps grid steps so v7x's two TensorCores each get >= 2 steps
    (prefetch/compute/writeback overlap needs more than one step per core)."""
    b8 = _round_up(max(batch, 1), 8)
    tb = min(_round_up(max(tile_b, 8), 8), b8)
    if b8 >= min_steps * min_rows_per_step:
        tb = min(tb, _round_up(-(-b8 // min_steps), 8))
    return tb


def dqn_kernel(x_ref, w1_ref, b1_ref, w2_ref, b2_ref, w3_ref, b3_ref, out_ref):
    # Fused 3-layer MLP on one (TILE_B, in) batch tile. Weights may be f32 or
    # bf16 (cast once, outside the jitted forward); activations are cast to the
    # weight dtype so the MXU runs in that dtype while accumulation, bias add
    # and ReLU stay f32. With f32 weights the casts are no-ops (v5e-friendly).
    w_dtype = w1_ref.dtype
    x = x_ref[...].astype(w_dtype)
    h1 = jnp.dot(x, w1_ref[...], preferred_element_type=jnp.float32) + b1_ref[...]
    h1 = jnp.maximum(h1, 0.0)
    h2 = jnp.dot(h1.astype(w_dtype), w2_ref[...],
                 preferred_element_type=jnp.float32) + b2_ref[...]
    h2 = jnp.maximum(h2, 0.0)
    out = jnp.dot(h2.astype(w_dtype), w3_ref[...],
                  preferred_element_type=jnp.float32) + b3_ref[...]
    out_ref[...] = out.astype(out_ref.dtype)


@functools.partial(jax.jit, static_argnames=("tile_b", "out_dtype"))
def dqn_forward(x, params, *, tile_b=DEFAULT_TILE_B, out_dtype=jnp.float32):
    w1, b1, w2, b2, w3, b3 = params
    B, in_dim = x.shape
    out_dim = w3.shape[1]
    out_itemsize = jnp.dtype(out_dtype).itemsize

    # --- batch tiling ---------------------------------------------------------
    tb = _choose_tile_b(B, tile_b)
    b_pad = _round_up(B, tb)
    if b_pad != B:
        x = jnp.pad(x, ((0, b_pad - B), (0, 0)))
    grid = (b_pad // tb,)

    # Weights/biases: constant index_map -> stay VMEM-resident across steps.
    def const_spec(arr):
        return pl.BlockSpec(arr.shape, lambda i: (0, 0))

    # --- VMEM budget derived from the tile footprint --------------------------
    # x tiles are lane-padded in_dim -> 128 in VMEM; out tiles likewise; plus
    # h1/h2/out f32 intermediates and the (tiny) resident weights. 2x headroom.
    weight_bytes = sum(int(a.size) * a.dtype.itemsize
                       for a in (w1, b1, w2, b2, w3, b3))
    est = (2 * tb * _round_up(in_dim, LANE) * x.dtype.itemsize      # x, 2 bufs
           + 2 * tb * _round_up(out_dim, LANE) * out_itemsize       # out, 2 bufs
           + 3 * tb * LANE * 4                                      # h1/h2/out f32
           + weight_bytes)
    # Default tile -> 32 MiB (safe on v7x's 64 MiB physical VMEM). Only grows
    # past 32 MiB if the caller asks for v5e/v6e-sized tiles (tb >= ~8K rows).
    vmem_limit = int(min(96 << 20, max(32 << 20, 2 * est)))

    flops = 2 * b_pad * (in_dim * 128 + 128 * 64 + 64 * out_dim)
    bytes_accessed = (int(x.size) * x.dtype.itemsize
                      + b_pad * out_dim * out_itemsize
                      + weight_bytes)

    out = pl.pallas_call(
        dqn_kernel,
        out_shape=jax.ShapeDtypeStruct((b_pad, out_dim), out_dtype),
        grid_spec=pltpu.PrefetchScalarGridSpec(
            num_scalar_prefetch=0,
            grid=grid,
            in_specs=[
                pl.BlockSpec((tb, in_dim), lambda i: (i, 0)),   # x: batch-tiled
                const_spec(w1), const_spec(b1),
                const_spec(w2), const_spec(b2),
                const_spec(w3), const_spec(b3),
            ],
            # Narrow output: block last dim == full array dim, HBM side is
            # contiguous -> ~32x less writeback than the 128-lane-padded f32.
            out_specs=pl.BlockSpec((tb, out_dim), lambda i: (i, 0)),
        ),
        compiler_params=pltpu.CompilerParams(
            dimension_semantics=("parallel",),   # shard batch tiles across TCs
            vmem_limit_bytes=vmem_limit,
        ),
        cost_estimate=pl.CostEstimate(
            flops=flops, transcendentals=0, bytes_accessed=bytes_accessed),
    )(x, w1, b1, w2, b2, w3, b3)

    return out[:B, :]


def cast_params_bf16(params):
    """Cast weight matrices to bf16 ONCE, outside the jitted forward (v6e/v7x
    byte win: half-size resident-weight DMA, bf16 MXU operands). Biases stay
    f32 since they add into f32 accumulators."""
    w1, b1, w2, b2, w3, b3 = params
    return (w1.astype(jnp.bfloat16), b1,
            w2.astype(jnp.bfloat16), b2,
            w3.astype(jnp.bfloat16), b3)


def init_params(key, input_size, output_size):
    # Deterministic synthetic init (Kaiming-uniform-like), shapes match nn.Linear
    # but pre-transposed to (in_features, out_features) so the kernel does x @ W + b.
    ks = jax.random.split(key, 6)

    def lin(kw, kb, fan_in, fan_out):
        bound = 1.0 / jnp.sqrt(jnp.float32(fan_in))
        w = jax.random.uniform(kw, (fan_in, fan_out), jnp.float32, -bound, bound)
        b = jax.random.uniform(kb, (1, fan_out), jnp.float32, -bound, bound)
        return w, b

    w1, b1 = lin(ks[0], ks[1], input_size, 128)
    w2, b2 = lin(ks[2], ks[3], 128, 64)
    w3, b3 = lin(ks[4], ks[5], 64, output_size)
    return (w1, b1, w2, b2, w3, b3)


def reference_forward(x, params):
    w1, b1, w2, b2, w3, b3 = params
    h1 = jnp.maximum(x @ w1 + b1, 0.0)
    h2 = jnp.maximum(h1 @ w2 + b2, 0.0)
    return h2 @ w3 + b3


if __name__ == "__main__":
    key = jax.random.PRNGKey(0)
    k_x, k_xl, k_p = jax.random.split(key, 3)

    input_size = 16   # state dimension
    output_size = 4   # number of discrete actions
    params = init_params(k_p, input_size, output_size)

    # Small per-step case (matches the original module usage): single grid step.
    x_small = jax.random.normal(k_x, (2, input_size), dtype=jnp.float32)
    out_small = jax.block_until_ready(dqn_forward(x_small, params))
    ref_small = reference_forward(x_small, params)
    assert out_small.shape == (2, output_size)
    assert jnp.allclose(out_small, ref_small, atol=1e-5, rtol=1e-5)

    # Replay-buffer sized batch: exercises the multi-step batch grid (>=4 steps,
    # so both v7x TensorCores get pipelined work) + batch padding.
    x_large = jax.random.normal(k_xl, (1000, input_size), dtype=jnp.float32)
    out_large = jax.block_until_ready(dqn_forward(x_large, params))
    ref_large = reference_forward(x_large, params)
    assert out_large.shape == (1000, output_size)
    assert jnp.allclose(out_large, ref_large, atol=1e-4, rtol=1e-4)

    # bf16 weights cast ONCE outside the forward + bf16 output (halves writeback);
    # looser tolerance for the reduced-precision path.
    params_bf16 = cast_params_bf16(params)
    out_bf16 = jax.block_until_ready(
        dqn_forward(x_large, params_bf16, out_dtype=jnp.bfloat16))
    assert out_bf16.shape == (1000, output_size)
    assert out_bf16.dtype == jnp.bfloat16
    assert jnp.allclose(out_bf16.astype(jnp.float32), ref_large,
                        atol=5e-2, rtol=5e-2)

    print("KERNEL_OK")
</pallas_src>

<mosaic_0001>
module attributes {stable_mosaic.version = 11 : i64} {
  func.func @dqn_kernel(%arg0: i32, %arg1: memref<8x16xf32, #tpu.memory_space<vmem>>, %arg2: memref<16x128xf32, #tpu.memory_space<vmem>>, %arg3: memref<1x128xf32, #tpu.memory_space<vmem>>, %arg4: memref<128x64xf32, #tpu.memory_space<vmem>>, %arg5: memref<1x64xf32, #tpu.memory_space<vmem>>, %arg6: memref<64x4xf32, #tpu.memory_space<vmem>>, %arg7: memref<1x4xf32, #tpu.memory_space<vmem>>, %arg8: memref<8x4xf32, #tpu.memory_space<vmem>>) attributes {dimension_semantics = [#tpu.dimension_semantics<parallel>], iteration_bounds = array<i64: 1>, scalar_prefetch = 0 : i64, scratch_operands = 0 : i64, tpu.core_type = #tpu.core_type<tc>, window_params = [{transform_indices = @transform_0, window_bounds = array<i64: 8, 16>}, {pipeline_mode = #tpu.pipeline_mode<synchronous>, transform_indices = @transform_1, window_bounds = array<i64: 16, 128>}, {pipeline_mode = #tpu.pipeline_mode<synchronous>, transform_indices = @transform_2, window_bounds = array<i64: 1, 128>}, {pipeline_mode = #tpu.pipeline_mode<synchronous>, transform_indices = @transform_3, window_bounds = array<i64: 128, 64>}, {pipeline_mode = #tpu.pipeline_mode<synchronous>, transform_indices = @transform_4, window_bounds = array<i64: 1, 64>}, {pipeline_mode = #tpu.pipeline_mode<synchronous>, transform_indices = @transform_5, window_bounds = array<i64: 64, 4>}, {pipeline_mode = #tpu.pipeline_mode<synchronous>, transform_indices = @transform_6, window_bounds = array<i64: 1, 4>}, {transform_indices = @transform_7, window_bounds = array<i64: 8, 4>}]} {
    %c0 = arith.constant 0 : index
    %c0_0 = arith.constant 0 : index
    %0 = vector.load %arg1[%c0, %c0_0] : memref<8x16xf32, #tpu.memory_space<vmem>>, vector<8x16xf32>
    %c0_1 = arith.constant 0 : index
    %c0_2 = arith.constant 0 : index
    %1 = vector.load %arg2[%c0_1, %c0_2] : memref<16x128xf32, #tpu.memory_space<vmem>>, vector<16x128xf32>
    %cst = arith.constant dense<0.000000e+00> : vector<8x128xf32>
    %2 = tpu.matmul %0, %1, %cst {dimension_numbers = #tpu.dot_dimension_numbers<[1], [0], [0], [1], [0, 0, 1, 1], [], []>} : vector<8x16xf32>, vector<16x128xf32>, vector<8x128xf32> -> vector<8x128xf32>
    %c0_3 = arith.constant 0 : index
    %c0_4 = arith.constant 0 : index
    %3 = vector.load %arg3[%c0_3, %c0_4] : memref<1x128xf32, #tpu.memory_space<vmem>>, vector<1x128xf32>
    %4 = vector.broadcast %3 : vector<1x128xf32> to vector<8x128xf32>
    %5 = arith.addf %2, %4 : vector<8x128xf32>
    %cst_5 = arith.constant 0.000000e+00 : f32
    %6 = vector.broadcast %cst_5 : f32 to vector<8x128xf32>
    %7 = arith.maximumf %5, %6 : vector<8x128xf32>
    %c0_6 = arith.constant 0 : index
    %c0_7 = arith.constant 0 : index
    %8 = vector.load %arg4[%c0_6, %c0_7] : memref<128x64xf32, #tpu.memory_space<vmem>>, vector<128x64xf32>
    %cst_8 = arith.constant dense<0.000000e+00> : vector<8x64xf32>
    %9 = tpu.matmul %7, %8, %cst_8 {dimension_numbers = #tpu.dot_dimension_numbers<[1], [0], [0], [1], [0, 0, 1, 1], [], []>} : vector<8x128xf32>, vector<128x64xf32>, vector<8x64xf32> -> vector<8x64xf32>
    %c0_9 = arith.constant 0 : index
    %c0_10 = arith.constant 0 : index
    %10 = vector.load %arg5[%c0_9, %c0_10] : memref<1x64xf32, #tpu.memory_space<vmem>>, vector<1x64xf32>
    %11 = vector.broadcast %10 : vector<1x64xf32> to vector<8x64xf32>
    %12 = arith.addf %9, %11 : vector<8x64xf32>
    %cst_11 = arith.constant 0.000000e+00 : f32
    %13 = vector.broadcast %cst_11 : f32 to vector<8x64xf32>
    %14 = arith.maximumf %12, %13 : vector<8x64xf32>
    %c0_12 = arith.constant 0 : index
    %c0_13 = arith.constant 0 : index
    %15 = vector.load %arg6[%c0_12, %c0_13] : memref<64x4xf32, #tpu.memory_space<vmem>>, vector<64x4xf32>
    %cst_14 = arith.constant dense<0.000000e+00> : vector<8x4xf32>
    %16 = tpu.matmul %14, %15, %cst_14 {dimension_numbers = #tpu.dot_dimension_numbers<[1], [0], [0], [1], [0, 0, 1, 1], [], []>} : vector<8x64xf32>, vector<64x4xf32>, vector<8x4xf32> -> vector<8x4xf32>
    %c0_15 = arith.constant 0 : index
    %c0_16 = arith.constant 0 : index
    %17 = vector.load %arg7[%c0_15, %c0_16] : memref<1x4xf32, #tpu.memory_space<vmem>>, vector<1x4xf32>
    %18 = vector.broadcast %17 : vector<1x4xf32> to vector<8x4xf32>
    %19 = arith.addf %16, %18 : vector<8x4xf32>
    %c0_17 = arith.constant 0 : index
    %c0_18 = arith.constant 0 : index
    %20 = vector.load %arg8[%c0_17, %c0_18] : memref<8x4xf32, #tpu.memory_space<vmem>>, vector<8x4xf32>
    tpu.vector_store %arg8[%c0_17, %c0_18], %19 {strides = array<i32>} : memref<8x4xf32, #tpu.memory_space<vmem>>, vector<8x4xf32>,
    return
  }
  func.func @transform_0(%arg0: i32) -> (i32, i32) {
    %c0_i32 = arith.constant 0 : i32
    %c0_i32_0 = arith.constant 0 : i32
    return %arg0, %c0_i32 : i32, i32
  }
  func.func @transform_1(%arg0: i32) -> (i32, i32) {
    %c0_i32 = arith.constant 0 : i32
    %c0_i32_0 = arith.constant 0 : i32
    %c0_i32_1 = arith.constant 0 : i32
    return %c0_i32, %c0_i32_0 : i32, i32
  }
  func.func @transform_2(%arg0: i32) -> (i32, i32) {
    %c0_i32 = arith.constant 0 : i32
    %c0_i32_0 = arith.constant 0 : i32
    %c0_i32_1 = arith.constant 0 : i32
    return %c0_i32, %c0_i32_0 : i32, i32
  }
  func.func @transform_3(%arg0: i32) -> (i32, i32) {
    %c0_i32 = arith.constant 0 : i32
    %c0_i32_0 = arith.constant 0 : i32
    %c0_i32_1 = arith.constant 0 : i32
    return %c0_i32, %c0_i32_0 : i32, i32
  }
  func.func @transform_4(%arg0: i32) -> (i32, i32) {
    %c0_i32 = arith.constant 0 : i32
    %c0_i32_0 = arith.constant 0 : i32
    %c0_i32_1 = arith.constant 0 : i32
    return %c0_i32, %c0_i32_0 : i32, i32
  }
  func.func @transform_5(%arg0: i32) -> (i32, i32) {
    %c0_i32 = arith.constant 0 : i32
    %c0_i32_0 = arith.constant 0 : i32
    %c0_i32_1 = arith.constant 0 : i32
    return %c0_i32, %c0_i32_0 : i32, i32
  }
  func.func @transform_6(%arg0: i32) -> (i32, i32) {
    %c0_i32 = arith.constant 0 : i32
    %c0_i32_0 = arith.constant 0 : i32
    %c0_i32_1 = arith.constant 0 : i32
    return %c0_i32, %c0_i32_0 : i32, i32
  }
  func.func @transform_7(%arg0: i32) -> (i32, i32) {
    %c0_i32 = arith.constant 0 : i32
    %c0_i32_0 = arith.constant 0 : i32
    return %arg0, %c0_i32 : i32, i32
  }
}

</mosaic_0001>

<bundles_post_ra>
// kernel: dqn_forward.1
= control target key start
LH: loop header
LB: loop body
LE: loop exit
PB: predicated region body
PF: predicated region fallthrough
CT: control target
= control target key end

     0   :  { %v437_v0 = vmov 0.0|0.0   ;;  %vm438_vm0 = vmmov 0   ;;  %v439_v3 = vmov 0.0   ;;  %vm36_vm1 = vcmask 130048   ;;  %s589_s1 = inlined_call_operand.vmem [shape: f32[16,128], index: 1, kind: input, shape index: {}]   ;;  %s590_s3 = inlined_call_operand.vmem [shape: f32[128,64], index: 3, kind: input, shape index: {}]   ;;  %s591_s0 = inlined_call_operand.vmem [shape: f32[8,16], index: 0, kind: input, shape index: {}]   ;;  %s592_s5 = inlined_call_operand.vmem [shape: f32[64,4], index: 5, kind: input, shape index: {}]   ;;  %s593_s2 = inlined_call_operand.vmem [shape: f32[1,128], index: 2, kind: input, shape index: {}]   ;;  %s594_s4 = inlined_call_operand.vmem [shape: f32[1,64], index: 4, kind: input, shape index: {}]   ;;  %s595_s6 = inlined_call_operand.vmem [shape: f32[1,4], index: 6, kind: input, shape index: {}]   ;;  %s596_s7 = inlined_call_operand.vmem [shape: f32[8,4], index: 7, kind: output, shape index: {}]  }
   0x1   :  { %395 = vmatprep.subr.bf16.mxu0 %v437_v0  ;;  %v27_v1 = vld [vmem:[%s589_s1] sm:$0xff]  ;;  %v28_v2 = vld [vmem:[%s589_s1 + $0x8] sm:$0xff]  ;;  %338 = vmatprep.mubr.msk.f32.mxu0 %vm438_vm0, %v439_v3  ;;  %v113_v7 = vld [vmem:[%s590_s3 + $0x10] sm:$0xff]  ;;  %vm220_vm2 = vcmask 523264   ;;  %vm294_vm3 = vcmask 31744  }
   0x2   :  { %v396_v4 = vpack.c.bf16 %v28_v2, %v27_v1  ;;  %398 = vmatprep.subr.bf16.mxu1 %v437_v0  ;;  %v111_v5 = vld [vmem:[%s590_s3] sm:$0xff]  ;;  %v112_v6 = vld [vmem:[%s590_s3 + $0x8] sm:$0xff]  ;;  %373 = vmatprep.mubr.msk.f32.mxu1 %vm438_vm0, %v439_v3  ;;  %v114_v9 = vld [vmem:[%s590_s3 + $0x18] sm:$0xff] }
   0x3   :  { %v399_v8 = vpack.c.bf16 %v112_v6, %v111_v5  ;;  %v26_v10 = vld [vmem:[%s591_s0] sm:$0xff]  ;;  %v402_v11 = vpack.c.bf16 %v114_v9, %v113_v7  ;;  %v116_v13 = vld [vmem:[%s590_s3 + $0x28] sm:$0xff]  ;;  %v117_v15 = vld [vmem:[%s590_s3 + $0x30] sm:$0xff] }
   0x4   :  { %397 = vmatpush3.bf16.msra.mxu0 %v396_v4  ;;  %v115_v12 = vld [vmem:[%s590_s3 + $0x20] sm:$0xff]  ;;  %v118_v16 = vld [vmem:[%s590_s3 + $0x38] sm:$0xff]  ;;  %v120_v19 = vld [vmem:[%s590_s3 + $0x48] sm:$0xff] }
   0x5   :  { %400 = vmatpush3.bf16.msra.mxu1 %v399_v8  ;;  %422 = vmatprep.subr.bf16.mxu0 %v437_v0  ;;  %v405_v14 = vpack.c.bf16 %v116_v13, %v115_v12  ;;  %v408_v17 = vpack.c.bf16 %v118_v16, %v117_v15  ;;  %v119_v18 = vld [vmem:[%s590_s3 + $0x40] sm:$0xff]  ;;  %v121_v21 = vld [vmem:[%s590_s3 + $0x50] sm:$0xff]  ;;  %v122_v22 = vld [vmem:[%s590_s3 + $0x58] sm:$0xff] }
   0x6   :  { %401 = vmatprep.subr.bf16.mxu1 %v437_v0  ;;  %v411_v20 = vpack.c.bf16 %v120_v19, %v119_v18  ;;  %v414_v23 = vpack.c.bf16 %v122_v22, %v121_v21  ;;  %v123_v24 = vld [vmem:[%s590_s3 + $0x60] sm:$0xff]  ;;  %v124_v25 = vld [vmem:[%s590_s3 + $0x68] sm:$0xff]  ;;  %v125_v27 = vld [vmem:[%s590_s3 + $0x70] sm:$0xff] }
   0x7   :  { %339 = vmatmul.mubr.msk.f32.vlgmr.msra.gmra.mrb[0].mxu0 %vm36_vm1, %v26_v10  ;;  %v417_v26 = vpack.c.bf16 %v124_v25, %v123_v24  ;;  %v126_v28 = vld [vmem:[%s590_s3 + $0x78] sm:$0xff]  ;;  %v205_v30 = vld [vmem:[%s592_s5] sm:$0xff]  ;;  %v206_v31 = vld [vmem:[%s592_s5 + $0x8] sm:$0xff] }
   0x8   :  { %392 = vmatprep.mubr.msk.f32.mxu0 %vm438_vm0, %v439_v3  ;;  %v420_v29 = vpack.c.bf16 %v126_v28, %v125_v27  ;;  %v207_v32 = vld [vmem:[%s592_s5 + $0x10] sm:$0xff]  ;;  %v423_v33 = vpack.c.bf16 %v206_v31, %v205_v30  ;;  %v208_v34 = vld [vmem:[%s592_s5 + $0x18] sm:$0xff]  ;;  %v209_v36 = vld [vmem:[%s592_s5 + $0x20] sm:$0xff] }
   0x9   :  { %403 = vmatpush3.bf16.msra.mxu1 %v402_v11  ;;  %v426_v35 = vpack.c.bf16 %v208_v34, %v207_v32  ;;  %v210_v37 = vld [vmem:[%s592_s5 + $0x28] sm:$0xff]  ;;  %v300_v39 = vld [vmem:[%s593_s2] ss:$0 sm:$0xff]  ;;  %v211_v44 = vld [vmem:[%s592_s5 + $0x30] sm:$0xff] }
   0xa   :  { %404 = vmatprep.subr.bf16.mxu1 %v437_v0  ;;  %424 = vmatpush3.bf16.msra.mxu0 %v423_v33  ;;  %v429_v38 = vpack.c.bf16 %v210_v37, %v209_v36  ;;  %v212_v45 = vld [vmem:[%s592_s5 + $0x38] sm:$0xff]  ;;  %v302_v47 = vld [vmem:[%s594_s4] ss:$0 sm:$0xff] }
   0xb   :  { %425 = vmatprep.subr.bf16.mxu0 %v437_v0  ;;  %v432_v46 = vpack.c.bf16 %v212_v45, %v211_v44  ;;  %v303_v52 = vld [vmem:[%s595_s6] ss:$0 sm:$0xff] }
   0xd   :  { %406 = vmatpush3.bf16.msra.mxu1 %v405_v14 }
   0xe   :  { %407 = vmatprep.subr.bf16.mxu1 %v437_v0  ;;  %427 = vmatpush3.bf16.msra.mxu0 %v426_v35 }
   0xf   :  { %428 = vmatprep.subr.bf16.mxu0 %v437_v0 }
  0x11   :  { %409 = vmatpush3.bf16.msra.mxu1 %v408_v17 }
  0x12   :  { %410 = vmatprep.subr.bf16.mxu1 %v437_v0  ;;  %430 = vmatpush3.bf16.msra.mxu0 %v429_v38 }
  0x13   :  { %431 = vmatprep.subr.bf16.mxu0 %v437_v0 }
  0x15   :  { %412 = vmatpush3.bf16.msra.mxu1 %v411_v20 }
  0x16   :  { %413 = vmatprep.subr.bf16.mxu1 %v437_v0  ;;  %433 = vmatpush3.bf16.msra.mxu0 %v432_v46 }
  0x19   :  { %415 = vmatpush3.bf16.msra.mxu1 %v414_v23 }
  0x1a   :  { %416 = vmatprep.subr.bf16.mxu1 %v437_v0 }
  0x1d   :  { %418 = vmatpush3.bf16.msra.mxu1 %v417_v26 }
  0x1e   :  { %419 = vmatprep.subr.bf16.mxu1 %v437_v0 }
  0x21   :  { %421 = vmatpush3.bf16.msra.mxu1 %v420_v29 }
  0xda   :  { %v106_v40 = vpop.f32.mrb[0].mxu0 }
  0xdb   :  { %v107_v41 = vadd.f32 %v300_v39, %v106_v40  ;;  %v340_v42 = vpop.f32.mrb[1].mxu0 }
  0xdd   :  { %v110_v43 = vmax.f32 %v107_v41, 0.0 }
  0xdf   :  { %374 = vmatmul.mubr.f32.vlgmr.msra.gmra.mrb[0].mxu1 %v110_v43 }
 0x1b2   :  { %v200_v48 = vpop.f32.mrb[0].mxu1 }
 0x1b3   :  { %v201_v49 = vadd.f32 %v302_v47, %v200_v48  ;;  %v375_v50 = vpop.f32.mrb[1].mxu1 }
 0x1b5   :  { %v204_v51 = vmax.f32 %v201_v49, 0.0 }
 0x1b7   :  { %393 = vmatmul.mubr.msk.f32.vlgmr.msra.gmra.mrb[2].mxu0 %vm220_vm2, %v204_v51 }
 0x28a   :  { %v290_v53 = vpop.f32.mrb[2].mxu0 }
 0x28b   :  { %v291_v54 = vadd.f32 %v303_v52, %v290_v53  ;;  %v394_v55 = vpop.f32.mrb[3].mxu0 }
 0x28d   :  { %295 = vst.msk [vmem:[%s596_s7] sm:$0xff] %vm294_vm3, %v291_v54 }

</bundles_post_ra>
